<compile_context>
chip_gen: v7x
topology: tpu7x:2x2x1
jax: 0.10.0
libtpu: 0.0.40
codegen_flags: <defaults>
</compile_context>

<pallas_src>
import functools

import jax
import jax.numpy as jnp
from jax.experimental import pallas as pl
from jax.experimental.pallas import tpu as pltpu


def _round_up(x: int, m: int) -> int:
    return (x + m - 1) // m * m


def _tskl_kernel(p_tea_ref, c_b_ref, stu_ref, out_ref, *, inv_tau):
    """One (tT, B, C) student tile -> scalar partial KL sum (lane-dense block)."""
    # s = stu / tau in f32.
    s = stu_ref[...].astype(jnp.float32) * inv_tau                   # (tT, B, C)

    # Stable logsumexp over classes (lane axis).
    m = jnp.max(s, axis=-1, keepdims=True)                           # (tT, B, 1)
    lse = m + jnp.log(jnp.sum(jnp.exp(s - m), axis=-1, keepdims=True))

    # sum_c p_tea * log_p_stu = sum_c p_tea * s - lse   (since sum_c p_tea = 1)
    # kl = sum_c p_tea*log_p_tea - sum_c p_tea*log_p_stu = c_b + lse - ce
    ce = jnp.sum(p_tea_ref[...] * s, axis=-1, keepdims=True)         # (tT, B, 1)
    kl = c_b_ref[...] + lse - ce                                     # (tT, B, 1)

    # Partial sum for this tile, written as a lane-dense (1, 8, 128) block.
    out_ref[...] = jnp.broadcast_to(jnp.sum(kl), out_ref.shape)


def tskl_loss(tea_logits, stu_spk_out, tau: float = 1.0,
              target_tile_bytes: int = 4 * 1024 * 1024,
              vmem_budget_bytes: int = 32 * 1024 * 1024):
    """Pallas TPU implementation of TSKLLoss.forward."""
    T, B, C = stu_spk_out.shape
    assert tea_logits.shape == (B, C)
    inv_tau = 1.0 / float(tau)
    scale = float(tau) * float(tau) / float(T * B)

    # --- Teacher side: tiny (B, C) work, hoisted out of the streaming loop. ---
    log_p_tea = jax.nn.log_softmax(tea_logits.astype(jnp.float32) * inv_tau, -1)
    p_tea = jnp.exp(log_p_tea)                                       # (B, C)
    c_b = jnp.sum(p_tea * log_p_tea, axis=-1, keepdims=True)         # (B, 1)

    # --- Byte-targeted tile size (accounting for (8,128) / dtype padding). ---
    itemsize = jnp.dtype(stu_spk_out.dtype).itemsize
    sub_in = max(8, (4 // max(itemsize, 1)) * 8)        # 8 f32 / 16 bf16 / 32 int8
    in_slice = _round_up(B, sub_in) * _round_up(C, 128) * itemsize   # input, per t
    f32_slice = _round_up(B, 8) * _round_up(C, 128) * 4              # f32 temps, per t
    per_t = 2 * in_slice + 6 * f32_slice   # dbl-buffered input + f32 temporaries
    tT = max(1, min(T,
                    target_tile_bytes // max(in_slice, 1),
                    vmem_budget_bytes // max(per_t, 1)))

    kernel = functools.partial(_tskl_kernel, inv_tau=inv_tau)

    def run(stu_part, t_block):
        n_blk = stu_part.shape[0] // t_block      # exact by construction
        out = pl.pallas_call(
            kernel,
            out_shape=jax.ShapeDtypeStruct((n_blk, 8, 128), jnp.float32),
            grid_spec=pltpu.PrefetchScalarGridSpec(
                num_scalar_prefetch=0,
                grid=(n_blk,),
                in_specs=[
                    pl.BlockSpec((B, C), lambda i: (0, 0)),          # teacher probs
                    pl.BlockSpec((B, 1), lambda i: (0, 0)),          # teacher entropy
                    pl.BlockSpec((t_block, B, C), lambda i: (i, 0, 0)),  # student tile
                ],
                out_specs=pl.BlockSpec((1, 8, 128), lambda i: (i, 0, 0)),
            ),
            compiler_params=pltpu.CompilerParams(
                dimension_semantics=("parallel",),
                vmem_limit_bytes=48 * 1024 * 1024,
            ),
        )(p_tea, c_b, stu_part)
        return jnp.sum(out[:, 0, 0])

    n_full = (T // tT) * tT
    rem = T - n_full
    parts = []
    if n_full > 0:
        parts.append(run(stu_spk_out[:n_full], tT))
    if rem > 0:
        parts.append(run(stu_spk_out[n_full:], rem))
    total = parts[0] if len(parts) == 1 else parts[0] + parts[1]
    return total * scale


def tskl_loss_ref(tea_logits, stu_spk_out, tau: float = 1.0):
    """Pure-JAX reference (mirrors the PyTorch forward exactly)."""
    log_p_stu = jax.nn.log_softmax(stu_spk_out / tau, axis=-1)
    log_p_tea = jax.nn.log_softmax(tea_logits / tau, axis=-1)[None]
    kl_per_t = (jnp.exp(log_p_tea) * (log_p_tea - log_p_stu)).sum(-1)
    return kl_per_t.mean(0).mean(0) * tau ** 2


if __name__ == "__main__":
    key = jax.random.PRNGKey(0)
    tau = 2.0

    # Case 1: single-tile path.
    T, B, C = 8, 4, 32
    k_tea, k_stu, key = jax.random.split(key, 3)
    tea_logits = jax.random.normal(k_tea, (B, C), dtype=jnp.float32)
    stu_spk_out = jax.random.normal(k_stu, (T, B, C), dtype=jnp.float32)
    out1 = tskl_loss(tea_logits, stu_spk_out, tau=tau)
    jax.block_until_ready(out1)
    ref1 = tskl_loss_ref(tea_logits, stu_spk_out, tau=tau)
    assert jnp.allclose(out1, ref1, atol=1e-5, rtol=1e-5), (out1, ref1)

    # Case 2: multi-tile grid + remainder tile (forced small tile size).
    T2 = 13
    k_tea2, k_stu2, key = jax.random.split(key, 3)
    tea2 = jax.random.normal(k_tea2, (B, C), dtype=jnp.float32)
    stu2 = jax.random.normal(k_stu2, (T2, B, C), dtype=jnp.float32)
    out2 = tskl_loss(tea2, stu2, tau=tau, target_tile_bytes=20 * 1024)
    jax.block_until_ready(out2)
    ref2 = tskl_loss_ref(tea2, stu2, tau=tau)
    assert jnp.allclose(out2, ref2, atol=1e-5, rtol=1e-5), (out2, ref2)

    print("KERNEL_OK")
</pallas_src>

<mosaic_0001>
module attributes {stable_mosaic.version = 11 : i64} {
  func.func @_tskl_kernel(%arg0: i32, %arg1: memref<4x32xf32, #tpu.memory_space<vmem>>, %arg2: memref<4x1xf32, #tpu.memory_space<vmem>>, %arg3: memref<8x4x32xf32, #tpu.memory_space<vmem>>, %arg4: memref<1x8x128xf32, #tpu.memory_space<vmem>>) attributes {dimension_semantics = [#tpu.dimension_semantics<parallel>], iteration_bounds = array<i64: 1>, scalar_prefetch = 0 : i64, scratch_operands = 0 : i64, tpu.core_type = #tpu.core_type<tc>, window_params = [{pipeline_mode = #tpu.pipeline_mode<synchronous>, transform_indices = @transform_0, window_bounds = array<i64: 4, 32>}, {pipeline_mode = #tpu.pipeline_mode<synchronous>, transform_indices = @transform_1, window_bounds = array<i64: 4, 1>}, {transform_indices = @transform_2, window_bounds = array<i64: 8, 4, 32>}, {transform_indices = @transform_3, window_bounds = array<i64: 1, 8, 128>}]} {
    %c0 = arith.constant 0 : index
    %c0_0 = arith.constant 0 : index
    %c0_1 = arith.constant 0 : index
    %0 = vector.load %arg3[%c0, %c0_0, %c0_1] : memref<8x4x32xf32, #tpu.memory_space<vmem>>, vector<8x4x32xf32>
    %cst = arith.constant 5.000000e-01 : f32
    %1 = vector.broadcast %cst : f32 to vector<8x4x32xf32>
    %2 = arith.mulf %0, %1 : vector<8x4x32xf32>
    %cst_2 = arith.constant dense<0xFF800000> : vector<8x4xf32>
    %3 = vector.multi_reduction <maximumf>, %2, %cst_2 [2] : vector<8x4x32xf32> to vector<8x4xf32>
    %4 = vector.shape_cast %3 : vector<8x4xf32> to vector<8x4x1xf32>
    %5 = vector.broadcast %4 : vector<8x4x1xf32> to vector<8x4x32xf32>
    %6 = arith.subf %2, %5 : vector<8x4x32xf32>
    %7 = math.exp %6 : vector<8x4x32xf32>
    %cst_3 = arith.constant dense<0.000000e+00> : vector<8x4xf32>
    %8 = vector.multi_reduction <add>, %7, %cst_3 [2] : vector<8x4x32xf32> to vector<8x4xf32>
    %9 = vector.shape_cast %8 : vector<8x4xf32> to vector<8x4x1xf32>
    %10 = math.log %9 : vector<8x4x1xf32>
    %11 = arith.addf %4, %10 : vector<8x4x1xf32>
    %c0_4 = arith.constant 0 : index
    %c0_5 = arith.constant 0 : index
    %12 = vector.load %arg1[%c0_4, %c0_5] : memref<4x32xf32, #tpu.memory_space<vmem>>, vector<4x32xf32>
    %13 = vector.shape_cast %12 : vector<4x32xf32> to vector<1x4x32xf32>
    %14 = vector.broadcast %13 : vector<1x4x32xf32> to vector<8x4x32xf32>
    %15 = arith.mulf %14, %2 : vector<8x4x32xf32>
    %cst_6 = arith.constant dense<0.000000e+00> : vector<8x4xf32>
    %16 = vector.multi_reduction <add>, %15, %cst_6 [2] : vector<8x4x32xf32> to vector<8x4xf32>
    %17 = vector.shape_cast %16 : vector<8x4xf32> to vector<8x4x1xf32>
    %c0_7 = arith.constant 0 : index
    %c0_8 = arith.constant 0 : index
    %18 = vector.load %arg2[%c0_7, %c0_8] : memref<4x1xf32, #tpu.memory_space<vmem>>, vector<4x1xf32>
    %19 = vector.shape_cast %18 : vector<4x1xf32> to vector<1x4x1xf32>
    %20 = vector.broadcast %19 : vector<1x4x1xf32> to vector<8x4x1xf32>
    %21 = arith.addf %20, %11 : vector<8x4x1xf32>
    %22 = arith.subf %21, %17 : vector<8x4x1xf32>
    %23 = vector.shape_cast %22 : vector<8x4x1xf32> to vector<1x8x4x1xf32>
    %cst_9 = arith.constant dense<0.000000e+00> : vector<1xf32>
    %24 = vector.multi_reduction <add>, %23, %cst_9 [1, 2, 3] : vector<1x8x4x1xf32> to vector<1xf32>
    %25 = vector.shape_cast %24 : vector<1xf32> to vector<1x1x1x1xf32>
    %26 = vector.extract %25[0, 0, 0, 0] : f32 from vector<1x1x1x1xf32>
    %27 = vector.broadcast %26 : f32 to vector<1x8x128xf32>
    %c0_10 = arith.constant 0 : index
    %c0_11 = arith.constant 0 : index
    %c0_12 = arith.constant 0 : index
    %28 = vector.load %arg4[%c0_10, %c0_11, %c0_12] : memref<1x8x128xf32, #tpu.memory_space<vmem>>, vector<1x8x128xf32>
    tpu.vector_store %arg4[%c0_10, %c0_11, %c0_12], %27 {strides = array<i32>} : memref<1x8x128xf32, #tpu.memory_space<vmem>>, vector<1x8x128xf32>,
    return
  }
  func.func @transform_0(%arg0: i32) -> (i32, i32) {
    %c0_i32 = arith.constant 0 : i32
    %c0_i32_0 = arith.constant 0 : i32
    %c0_i32_1 = arith.constant 0 : i32
    return %c0_i32, %c0_i32_0 : i32, i32
  }
  func.func @transform_1(%arg0: i32) -> (i32, i32) {
    %c0_i32 = arith.constant 0 : i32
    %c0_i32_0 = arith.constant 0 : i32
    %c0_i32_1 = arith.constant 0 : i32
    return %c0_i32, %c0_i32_0 : i32, i32
  }
  func.func @transform_2(%arg0: i32) -> (i32, i32, i32) {
    %c0_i32 = arith.constant 0 : i32
    %c0_i32_0 = arith.constant 0 : i32
    %c0_i32_1 = arith.constant 0 : i32
    return %arg0, %c0_i32, %c0_i32_0 : i32, i32, i32
  }
  func.func @transform_3(%arg0: i32) -> (i32, i32, i32) {
    %c0_i32 = arith.constant 0 : i32
    %c0_i32_0 = arith.constant 0 : i32
    %c0_i32_1 = arith.constant 0 : i32
    return %arg0, %c0_i32, %c0_i32_0 : i32, i32, i32
  }
}

</mosaic_0001>

<bundles_post_ra>
// kernel: tpu_custom_call.1
= control target key start
LH: loop header
LB: loop body
LE: loop exit
PB: predicated region body
PF: predicated region fallthrough
CT: control target
= control target key end

     0   :  { %8 = vsyncpa [#allocation3], 0  ;;  %s478_s0 = inlined_call_operand.vmem [shape: f32[4,32], index: 0, kind: input, shape index: {}]   ;;  %s479_s1 = inlined_call_operand.vmem [shape: f32[4,1], index: 1, kind: input, shape index: {}]   ;;  %s480_s2 = inlined_call_operand.hbm [shape: f32[8,4,32], index: 2, kind: input, shape index: {}]   ;;  %s481_s3 = inlined_call_operand.hbm [shape: f32[1,8,128], index: 3, kind: output, shape index: {}]  }
   0x1   :  { %9 = vsyncpa [#allocation4], 0  ;;  %s320_s12 = smov [#allocation2]   ;;  %s272_s16 = scalar_lea.hbm %s480_s2, 512 }
   0x2   :  { %s19_s13 = sshll.u32 %s320_s12, 4  ;;  %p273_p0 = scmp.ne.s32.totalorder %s480_s2, %s272_s16  ;;  %s20_s13 = int_to_ptr.vmem [resolvable:$true] %s19_s13 }
   0x3   :  { %p276_p1 = scmp.lt.u32.totalorder %s272_s16, %s480_s2 }
   0x5   :  { %p278_p2 = pnand %p276_p1, %p273_p0 }
   0x7   :  { %281 = shalt.err (!%p278_p2)
}
   0x8   :  { %s282_s21 = scalar_lea.vmem %s20_s13, 512  ;;  %p287_p4 = scmp.lt.s32.totalorder %s20_s13, %s20_s13 }
   0x9   :  { %p283_p3 = scmp.ne.s32.totalorder %s20_s13, %s282_s21  ;;  %p288_p5 = scmp.lt.s32.totalorder %s282_s21, %s282_s21 }
   0xb   :  { %p289_p6 = por %p288_p5, %p287_p4 }
   0xd   :  { %p290_p7 = pnand %p289_p6, %p283_p3 }
   0xf   :  { %293 = shalt.err (!%p290_p7)
}
  0x10   :  { %s321_s22 = smov 64   ;;  %s322_s23 = smov 4  }
  0x11   :  { %25 = dma.hbm_to_vmem [thread:$0]  %s480_s2, 512, %s20_s13, [#allocation3], %s321_s22, %s321_s22, %s322_s23  }
  0x12   :  { %316 = dma.done.wait [#allocation3], 512  }
  0x13   :  { %317 = vsyncadd [#allocation3], 4294966784  ;;  %vm45_vm0 = vcmask 257024   ;;  %v29_v0 = vld [vmem:[#allocation2] sm:$0xf]  ;;  %vm192_vm1 = vcmask 3072  }
  0x14   :  { %v31_v1 = vld [vmem:[#allocation2 + $0x8] sm:$0xf]  ;;  %v30_v2 = vld [vmem:[#allocation2 + $0x4] sm:$0xf]  ;;  %v356_v3 = vmul.f32 0.5, %v29_v0 }
  0x15   :  { %v358_v4 = vmul.f32 0.5, %v31_v1  ;;  %v360_v5 = vmul.f32 0.5, %v30_v2  ;;  %v32_v6 = vld [vmem:[#allocation2 + $0xc] sm:$0xf]  ;;  %v33_v8 = vld [vmem:[#allocation2 + $0x10] sm:$0xf] }
  0x16   :  { %v362_v7 = vmul.f32 0.5, %v32_v6  ;;  %v34_v9 = vld [vmem:[#allocation2 + $0x14] sm:$0xf]  ;;  %v46_v10 = vsel %vm45_vm0, %v356_v3, -inf  ;;  %v372_v14 = vmul.f32 0.5, %v33_v8 }
  0x17   :  { %v52_v11 = vsel %vm45_vm0, %v358_v4, -inf  ;;  %47 = vmax.xlane.f32.xlu0 %v46_v10  ;;  %v49_v12 = vsel %vm45_vm0, %v360_v5, -inf  ;;  %v374_v15 = vmul.f32 0.5, %v34_v9  ;;  %v35_v16 = vld [vmem:[#allocation2 + $0x18] sm:$0xf] }
  0x18   :  { %53 = vmax.xlane.f32.xlu1 %v52_v11  ;;  %v55_v13 = vsel %vm45_vm0, %v362_v7, -inf  ;;  %v36_v17 = vld [vmem:[#allocation2 + $0x1c] sm:$0xf]  ;;  %v58_v18 = vsel %vm45_vm0, %v372_v14, -inf  ;;  %v380_v20 = vmul.f32 0.5, %v35_v16 }
  0x19   :  { %v61_v19 = vsel %vm45_vm0, %v374_v15, -inf  ;;  %v382_v21 = vmul.f32 0.5, %v36_v17  ;;  %v142_v57 = vld [vmem:[%s478_s0] sm:$0xf] }
  0x1a   :  { %v64_v22 = vsel %vm45_vm0, %v380_v20, -inf  ;;  %v143_v61 = vmul.f32 %v142_v57, %v356_v3  ;;  %v144_v6 = vmul.f32 %v142_v57, %v360_v5  ;;  %v145_v8 = vmul.f32 %v142_v57, %v358_v4 }
  0x1b   :  { %50 = vmax.xlane.f32.xlu0 %v49_v12  ;;  %v67_v23 = vsel %vm45_vm0, %v382_v21, -inf  ;;  %v146_v10 = vmul.f32 %v142_v57, %v362_v7  ;;  %v147_v11 = vmul.f32 %v142_v57, %v372_v14 }
  0x1c   :  { %56 = vmax.xlane.f32.xlu1 %v55_v13  ;;  %v151_v2 = vsel %vm45_vm0, %v143_v61, 0.0  ;;  %v154_v9 = vsel %vm45_vm0, %v144_v6, 0.0 }
  0x1d   :  { %v160_v12 = vsel %vm45_vm0, %v146_v10, 0.0  ;;  %v163_v13 = vsel %vm45_vm0, %v147_v11, 0.0 }
  0x1f   :  { %59 = vmax.xlane.f32.xlu0 %v58_v18 }
  0x20   :  { %62 = vmax.xlane.f32.xlu1 %v61_v19 }
  0x23   :  { %65 = vmax.xlane.f32.xlu0 %v64_v22 }
  0x24   :  { %68 = vmax.xlane.f32.xlu1 %v67_v23 }
  0xa4   :  { %v388_v24 = vpop.xlane.xlu0 %47 }
  0xa5   :  { %v390_v25 = vpop.xlane.xlu1 %53  ;;  %v70_v26 = vsub.f32 %v356_v3, %v388_v24  ;;  %v157_v3 = vsel %vm45_vm0, %v145_v8, 0.0 }
  0xa6   :  { %v72_v27 = vsub.f32 %v358_v4, %v390_v25  ;;  %v149_v4 = vmul.f32 %v142_v57, %v380_v20 }
  0xa7   :  { %v78_v28 = vmul.f32 1.442695, %v70_v26 }
  0xa8   :  { %v82_v29 = vmul.f32 1.442695, %v72_v27  ;;  %v396_v30 = vpop.xlane.xlu0 %50  ;;  %v169_v17 = vsel %vm45_vm0, %v149_v4, 0.0 }
  0xa9   :  { %v398_v31 = vpop.xlane.xlu1 %56  ;;  %240 = vpow2.f32 %v78_v28  ;;  %v71_v32 = vsub.f32 %v360_v5, %v396_v30  ;;  %v148_v5 = vmul.f32 %v142_v57, %v374_v15 }
  0xaa   :  { %v73_v33 = vsub.f32 %v362_v7, %v398_v31  ;;  %242 = vpow2.f32 %v82_v29  ;;  %v150_v7 = vmul.f32 %v142_v57, %v382_v21 }
  0xab   :  { %v80_v34 = vmul.f32 1.442695, %v71_v32  ;;  %v166_v16 = vsel %vm45_vm0, %v148_v5, 0.0 }
  0xac   :  { %v84_v35 = vmul.f32 1.442695, %v73_v33  ;;  %v404_v36 = vpop.xlane.xlu0 %59 }
  0xad   :  { %v406_v37 = vpop.xlane.xlu1 %62  ;;  %244 = vpow2.f32 %v80_v34  ;;  %v74_v38 = vsub.f32 %v372_v14, %v404_v36  ;;  %v172_v14 = vsel %vm45_vm0, %v150_v7, 0.0 }
  0xae   :  { %v75_v39 = vsub.f32 %v374_v15, %v406_v37  ;;  %246 = vpow2.f32 %v84_v35 }
  0xaf   :  { %v86_v40 = vmul.f32 1.442695, %v74_v38 }
  0xb0   :  { %v88_v41 = vmul.f32 1.442695, %v75_v39  ;;  %v412_v42 = vpop.xlane.xlu0 %65 }
  0xb1   :  { %v414_v43 = vpop.xlane.xlu1 %68  ;;  %248 = vpow2.f32 %v86_v40  ;;  %v76_v44 = vsub.f32 %v380_v20, %v412_v42 }
  0xb2   :  { %v77_v45 = vsub.f32 %v382_v21, %v414_v43  ;;  %250 = vpow2.f32 %v88_v41  ;;  %v175_v21 = vld [vmem:[%s479_s1] sm:$0xf]  ;;  %s323_s1 = smov [#allocation5]  }
  0xb3   :  { %v241_v46 = vpop.eup %240  ;;  %v90_v47 = vmul.f32 1.442695, %v76_v44  ;;  %s225_s28 = sshll.u32 %s323_s1, 4  ;;  %s226_s28 = int_to_ptr.vmem [resolvable:$true] %s225_s28 }
  0xb4   :  { %v92_v48 = vmul.f32 1.442695, %v77_v45  ;;  %v243_v49 = vpop.eup %242  ;;  %v94_v50 = vsel %vm45_vm0, %v241_v46, 0.0  ;;  %s294_s30 = scalar_lea.vmem %s226_s28, 128  ;;  %p299_p9 = scmp.lt.s32.totalorder %s226_s28, %s226_s28 }
  0xb5   :  { %252 = vpow2.f32 %v90_v47  ;;  %95 = vadd.xlane.f32.xlu0 %v94_v50  ;;  %v100_v51 = vsel %vm45_vm0, %v243_v49, 0.0  ;;  %p295_p8 = scmp.ne.s32.totalorder %s226_s28, %s294_s30  ;;  %p300_p10 = scmp.lt.s32.totalorder %s294_s30, %s294_s30 }
  0xb6   :  { %254 = vpow2.f32 %v92_v48 }
  0xb7   :  { %v245_v52 = vpop.eup %244  ;;  %p301_p11 = por %p300_p10, %p299_p9 }
  0xb8   :  { %v247_v53 = vpop.eup %246  ;;  %v97_v54 = vsel %vm45_vm0, %v245_v52, 0.0 }
  0xb9   :  { %101 = vadd.xlane.f32.xlu0 %v100_v51  ;;  %98 = vadd.xlane.f32.xlu1 %v97_v54  ;;  %v103_v55 = vsel %vm45_vm0, %v247_v53, 0.0  ;;  %p302_p12 = pnand %p301_p11, %p295_p8 }
  0xbb   :  { %v249_v56 = vpop.eup %248 }
  0xbc   :  { %v251_v58 = vpop.eup %250  ;;  %v106_v59 = vsel %vm45_vm0, %v249_v56, 0.0 }
  0xbd   :  { %104 = vadd.xlane.f32.xlu1 %v103_v55  ;;  %107 = vadd.xlane.f32.xlu0 %v106_v59  ;;  %v109_v60 = vsel %vm45_vm0, %v251_v58, 0.0 }
  0xbf   :  { %v253_v62 = vpop.eup %252 }
  0xc0   :  { %v255_v63 = vpop.eup %254  ;;  %v112_v0 = vsel %vm45_vm0, %v253_v62, 0.0 }
  0xc1   :  { %110 = vadd.xlane.f32.xlu1 %v109_v60  ;;  %113 = vadd.xlane.f32.xlu0 %v112_v0  ;;  %v115_v1 = vsel %vm45_vm0, %v255_v63, 0.0 }
  0xc5   :  { %116 = vadd.xlane.f32.xlu1 %v115_v1  ;;  %152 = vadd.xlane.f32.xlu0 %v151_v2 }
  0xc9   :  { %155 = vadd.xlane.f32.xlu1 %v154_v9  ;;  %158 = vadd.xlane.f32.xlu0 %v157_v3 }
  0xcd   :  { %161 = vadd.xlane.f32.xlu1 %v160_v12  ;;  %164 = vadd.xlane.f32.xlu0 %v163_v13 }
  0xd1   :  { %167 = vadd.xlane.f32.xlu1 %v166_v16  ;;  %170 = vadd.xlane.f32.xlu0 %v169_v17 }
  0xd5   :  { %173 = vadd.xlane.f32.xlu1 %v172_v14 }
 0x142   :  { %v96_v18 = vpop.xlane.xlu0 %95 }
 0x143   :  { %256 = vlog2.f32 %v96_v18 }
 0x146   :  { %v99_v19 = vpop.xlane.xlu1 %98  ;;  %v102_v22 = vpop.xlane.xlu0 %101 }
 0x147   :  { %258 = vlog2.f32 %v99_v19 }
 0x148   :  { %260 = vlog2.f32 %v102_v22 }
 0x14a   :  { %v105_v15 = vpop.xlane.xlu1 %104  ;;  %v108_v20 = vpop.xlane.xlu0 %107 }
 0x14b   :  { %262 = vlog2.f32 %v105_v15 }
 0x14c   :  { %264 = vlog2.f32 %v108_v20 }
 0x14d   :  { %v257_v23 = vpop.eup %256 }
 0x14e   :  { %v119_v26 = vmul.f32 0.6931472, %v257_v23  ;;  %v111_v27 = vpop.xlane.xlu1 %110  ;;  %v114_v28 = vpop.xlane.xlu0 %113 }
 0x14f   :  { %266 = vlog2.f32 %v111_v27 }
 0x150   :  { %268 = vlog2.f32 %v114_v28  ;;  %v134_v29 = vadd.f32 %v119_v26, %v388_v24 }
 0x151   :  { %v259_v32 = vpop.eup %258 }
 0x152   :  { %v261_v33 = vpop.eup %260  ;;  %v121_v34 = vmul.f32 0.6931472, %v259_v32  ;;  %v117_v35 = vpop.xlane.xlu1 %116  ;;  %v176_v38 = vadd.f32 %v175_v21, %v134_v29 }
 0x153   :  { %v153_v39 = vpop.xlane.xlu0 %152  ;;  %v123_v40 = vmul.f32 0.6931472, %v261_v33  ;;  %270 = vlog2.f32 %v117_v35 }
 0x154   :  { %v135_v41 = vadd.f32 %v121_v34, %v396_v30  ;;  %v184_v48 = vsub.f32 %v176_v38, %v153_v39 }
 0x155   :  { %v263_v44 = vpop.eup %262  ;;  %v136_v45 = vadd.f32 %v123_v40, %v390_v25 }
 0x156   :  { %v265_v46 = vpop.eup %264  ;;  %v125_v47 = vmul.f32 0.6931472, %v263_v44  ;;  %v177_v49 = vadd.f32 %v175_v21, %v135_v41  ;;  %v156_v50 = vpop.xlane.xlu1 %155  ;;  %v193_v25 = vsel %vm192_vm1, %v184_v48, 0.0 }
 0x157   :  { %v159_v51 = vpop.xlane.xlu0 %158  ;;  %v127_v24 = vmul.f32 0.6931472, %v265_v46  ;;  %v178_v52 = vadd.f32 %v175_v21, %v136_v45 }
 0x158   :  { %v185_v53 = vsub.f32 %v177_v49, %v156_v50  ;;  %v137_v54 = vadd.f32 %v125_v47, %v398_v31 }
 0x159   :  { %v267_v55 = vpop.eup %266  ;;  %v186_v56 = vsub.f32 %v178_v52, %v159_v51  ;;  %v138_v57 = vadd.f32 %v127_v24, %v404_v36 }
 0x15a   :  { %v269_v30 = vpop.eup %268  ;;  %v129_v58 = vmul.f32 0.6931472, %v267_v55  ;;  %v194_v59 = vsel %vm192_vm1, %v185_v53, 0.0  ;;  %v179_v60 = vadd.f32 %v175_v21, %v137_v54  ;;  %v162_v61 = vpop.xlane.xlu1 %161 }
 0x15b   :  { %v165_v62 = vpop.xlane.xlu0 %164  ;;  %v131_v63 = vmul.f32 0.6931472, %v269_v30  ;;  %v195_v0 = vadd.f32 %v194_v59, %v193_v25  ;;  %v180_v1 = vadd.f32 %v175_v21, %v138_v57  ;;  %v196_v2 = vsel %vm192_vm1, %v186_v56, 0.0 }
 0x15c   :  { %v187_v6 = vsub.f32 %v179_v60, %v162_v61  ;;  %v139_v31 = vadd.f32 %v129_v58, %v406_v37 }
 0x15d   :  { %v271_v8 = vpop.eup %270  ;;  %v197_v9 = vadd.f32 %v196_v2, %v195_v0  ;;  %v188_v36 = vsub.f32 %v180_v1, %v165_v62  ;;  %v140_v3 = vadd.f32 %v131_v63, %v412_v42 }
 0x15e   :  { %v133_v10 = vmul.f32 0.6931472, %v271_v8  ;;  %v198_v11 = vsel %vm192_vm1, %v187_v6, 0.0  ;;  %v181_v12 = vadd.f32 %v175_v21, %v139_v31  ;;  %v168_v13 = vpop.xlane.xlu1 %167 }
 0x15f   :  { %v171_v5 = vpop.xlane.xlu0 %170  ;;  %v199_v4 = vadd.f32 %v198_v11, %v197_v9  ;;  %v182_v16 = vadd.f32 %v175_v21, %v140_v3  ;;  %v200_v17 = vsel %vm192_vm1, %v188_v36, 0.0 }
 0x160   :  { %v189_v7 = vsub.f32 %v181_v12, %v168_v13  ;;  %v141_v14 = vadd.f32 %v133_v10, %v414_v43 }
 0x161   :  { %v201_v18 = vadd.f32 %v200_v17, %v199_v4  ;;  %v190_v37 = vsub.f32 %v182_v16, %v171_v5 }
 0x162   :  { %v202_v19 = vsel %vm192_vm1, %v189_v7, 0.0  ;;  %v183_v22 = vadd.f32 %v175_v21, %v141_v14  ;;  %v174_v15 = vpop.xlane.xlu1 %173 }
 0x163   :  { %v203_v42 = vadd.f32 %v202_v19, %v201_v18  ;;  %v204_v20 = vsel %vm192_vm1, %v190_v37, 0.0 }
 0x164   :  { %v191_v23 = vsub.f32 %v183_v22, %v174_v15 }
 0x165   :  { %v205_v26 = vadd.f32 %v204_v20, %v203_v42 }
 0x166   :  { %v206_v27 = vsel %vm192_vm1, %v191_v23, 0.0 }
 0x167   :  { %v207_v28 = vadd.f32 %v206_v27, %v205_v26 }
 0x169   :  { %208 = vadd.xlane.f32.xlu0 %v207_v28 }
 0x1f6   :  { %v209_v29 = vpop.xlane.xlu0 %208 }
 0x1f7   :  { %v210_v32 = vrot.slane %v209_v29, 4 }
 0x1f9   :  { %v211_v33 = vadd.f32 %v210_v32, %v209_v29 }
 0x1fb   :  { %v212_v34 = vrot.slane %v211_v33, 2 }
 0x1fd   :  { %v213_v43 = vadd.f32 %v212_v34, %v211_v33 }
 0x1ff   :  { %v214_v35 = vrot.slane %v213_v43, 1 }
 0x201   :  { %v215_v38 = vadd.f32 %v214_v35, %v213_v43 }
 0x203   :  { %234 = vpush %v215_v38 }
 0x234   :  { %s235_s29 = spop %234 }
 0x235   :  { %v217_v21 = vstv %s235_s29 }
 0x236   :  { %218 = vst [vmem:[#allocation5] sm:$0xff] %v217_v21 }
 0x237   :  { %305 = shalt.err (!%p302_p12)
}
 0x238   :  { %s306_s6 = scalar_lea.hbm %s481_s3, 128 }
 0x239   :  { %p307_p13 = scmp.ne.s32.totalorder %s481_s3, %s306_s6  ;;  %p310_p0 = scmp.lt.u32.totalorder %s306_s6, %s481_s3 }
 0x23b   :  { %p312_p1 = pnand %p310_p0, %p307_p13 }
 0x23d   :  { %315 = shalt.err (!%p312_p1)
}
 0x23e   :  { %228 = dma.vmem_to_hbm [thread:$0]  %s226_s28, 128, %s481_s3, [#allocation4]  }
 0x23f   :  { %318 = dma.done.wait [#allocation4], 128  }
 0x240   :  { %319 = vsyncadd [#allocation4], 4294967168 }
 0x241   :  { %232 = vsyncpa [#allocation3], 1 }
 0x242   :  { %233 = vsyncpa [#allocation4], 1 }

</bundles_post_ra>
